<compile_context>
chip_gen: v7x
topology: tpu7x:2x2x1
jax: 0.10.0
libtpu: 0.0.40
codegen_flags: <defaults>
</compile_context>

<pallas_src>
import functools

import jax
import jax.numpy as jnp
from jax.experimental import pallas as pl
from jax.experimental.pallas import tpu as pltpu


MXU_TILE = 256   # v6e / v7x MXU contraction width; use 128 on v5e.
LANE = 128


def _round_up(x, m):
    return (x + m - 1) // m * m


def _pad2(x, rows, cols):
    r, c = x.shape
    return jnp.pad(x, ((0, rows - r), (0, cols - c)))


# ----------------------------------------------------------------------------
# Pallas kernel: one NGCF propagation layer, tiled over (row, reduction)
# ----------------------------------------------------------------------------
def ngcf_layer_kernel(a_ref, ego_k_ref, ego_row_ref, w_cat_ref, b_ref,
                      new_f32_ref, new_bf16_ref, norm_ref, acc_ref):
    """grid = (N//TM, N//TK); reduction axis last ("arbitrary")."""
    k = pl.program_id(1)

    @pl.when(k == 0)
    def _():
        acc_ref[...] = jnp.zeros_like(acc_ref)

    # side partial-sum:  A[i_blk, k_blk] @ ego[k_blk, :]   (bf16 MXU, fp32 acc)
    acc_ref[...] += jnp.dot(a_ref[...], ego_k_ref[...],
                            preferred_element_type=jnp.float32)

    @pl.when(k == pl.num_programs(1) - 1)
    def _():
        side = acc_ref[...]                     # (TM, Dp_in) fp32
        ego = ego_row_ref[...]                  # (TM, Dp_in) fp32
        # Merged matmul:
        #   [side+ego | ego*side] @ [W_gc ; W_bi] + (b_gc + b_bi)
        # Dp_in is a multiple of 128, so the concat boundary is a lane-tile
        # boundary (no cross-lane relayout) and K = 2*Dp_in feeds the full
        # 256-wide MXU contraction on v6e/v7x.
        lhs = jnp.concatenate([side + ego, ego * side], axis=-1)
        z = jnp.dot(lhs.astype(jnp.bfloat16), w_cat_ref[...],
                    preferred_element_type=jnp.float32) + b_ref[...]

        # LeakyReLU(0.2) as one vmul + one vmax (no compare/select mask).
        new_ego = jnp.maximum(z, 0.2 * z)
        # TODO(synk): mess_dropout is a training-time stochastic op; identity
        # (eval mode) here.
        new_f32_ref[...] = new_ego
        new_bf16_ref[...] = new_ego.astype(jnp.bfloat16)

        # F.normalize(p=2, dim=1, eps=1e-12)  ==  x * rsqrt(max(sumsq, 1e-24))
        sumsq = jnp.sum(new_ego * new_ego, axis=1, keepdims=True)
        norm_ref[...] = new_ego * jax.lax.rsqrt(jnp.maximum(sumsq, 1e-24))


def ngcf_layer(a_bf16, ego_bf16, ego_f32, w_cat_bf16, b_f32, *, tm, tk):
    """One propagation layer. Returns (new_ego_f32, new_ego_bf16, norm_f32)."""
    n, dp_in = ego_f32.shape
    dp_out = w_cat_bf16.shape[1]
    grid = (n // tm, n // tk)

    flops = (2 * n * n * dp_in                 # A_hat @ ego
             + 2 * n * (2 * dp_in) * dp_out    # merged weight matmul
             + 8 * n * dp_out)                 # elementwise
    bytes_accessed = (a_bf16.size * 2 + ego_bf16.size * 2 + ego_f32.size * 4
                      + w_cat_bf16.size * 2 + b_f32.size * 4
                      + n * dp_out * (4 + 2 + 4))

    return pl.pallas_call(
        ngcf_layer_kernel,
        out_shape=(
            jax.ShapeDtypeStruct((n, dp_out), jnp.float32),   # new ego (fp32)
            jax.ShapeDtypeStruct((n, dp_out), jnp.bfloat16),  # new ego (bf16)
            jax.ShapeDtypeStruct((n, dp_out), jnp.float32),   # L2-normalized
        ),
        grid_spec=pltpu.PrefetchScalarGridSpec(
            num_scalar_prefetch=0,
            grid=grid,
            in_specs=[
                pl.BlockSpec((tm, tk), lambda i, k: (i, k)),          # A_hat
                pl.BlockSpec((tk, dp_in), lambda i, k: (k, 0)),       # ego (contraction)
                pl.BlockSpec((tm, dp_in), lambda i, k: (i, 0)),       # ego (row tile)
                pl.BlockSpec((2 * dp_in, dp_out), lambda i, k: (0, 0)),  # [W_gc;W_bi]
                pl.BlockSpec((1, dp_out), lambda i, k: (0, 0)),       # b_gc + b_bi
            ],
            out_specs=[
                pl.BlockSpec((tm, dp_out), lambda i, k: (i, 0)),
                pl.BlockSpec((tm, dp_out), lambda i, k: (i, 0)),
                pl.BlockSpec((tm, dp_out), lambda i, k: (i, 0)),
            ],
            scratch_shapes=[pltpu.VMEM((tm, dp_in), jnp.float32)],
        ),
        compiler_params=pltpu.CompilerParams(
            dimension_semantics=("parallel", "arbitrary"),
            vmem_limit_bytes=32 * 1024 * 1024,
        ),
        cost_estimate=pl.CostEstimate(
            flops=flops, transcendentals=n, bytes_accessed=bytes_accessed),
    )(a_bf16, ego_bf16, ego_f32, w_cat_bf16, b_f32)


# ----------------------------------------------------------------------------
# Model wrapper (param setup, lane-dense padding, per-layer calls, gather)
# ----------------------------------------------------------------------------
def xavier_uniform(key, shape):
    fan_in, fan_out = shape
    bound = jnp.sqrt(6.0 / (fan_in + fan_out))
    return jax.random.uniform(key, shape, jnp.float32, -bound, bound)


def init_params(key, n_user, n_item, emb_size, layers):
    keys = jax.random.split(key, 2 + 4 * len(layers))
    params = {
        "user_emb": xavier_uniform(keys[0], (n_user, emb_size)),
        "item_emb": xavier_uniform(keys[1], (n_item, emb_size)),
    }
    dims = [emb_size] + list(layers)
    layer_w = []
    for k in range(len(layers)):
        kw = keys[2 + 4 * k: 2 + 4 * (k + 1)]
        layer_w.append((
            xavier_uniform(kw[0], (dims[k], dims[k + 1])),    # W_gc_k
            xavier_uniform(kw[1], (1, dims[k + 1])),          # b_gc_k
            xavier_uniform(kw[2], (dims[k], dims[k + 1])),    # W_bi_k
            xavier_uniform(kw[3], (1, dims[k + 1])),          # b_bi_k
        ))
    params["layers"] = layer_w
    return params


def build_norm_adj(key, n_user, n_item):
    """Symmetrically normalized bipartite adjacency (dense, deterministic)."""
    n = n_user + n_item
    r = (jax.random.uniform(key, (n_user, n_item)) < 0.3).astype(jnp.float32)
    a = jnp.zeros((n, n), jnp.float32)
    a = a.at[:n_user, n_user:].set(r)
    a = a.at[n_user:, :n_user].set(r.T)
    deg = jnp.sum(a, axis=1)
    d_inv_sqrt = jnp.where(deg > 0, 1.0 / jnp.sqrt(jnp.maximum(deg, 1e-12)), 0.0)
    return a * d_inv_sqrt[:, None] * d_inv_sqrt[None, :]


@functools.partial(jax.jit, static_argnames=("n_user",))
def ngcf_forward(a_hat, params, users, pos_items, neg_items, n_user):
    # drop_flag=False semantics: use A_hat directly (no node dropout).
    ego0 = jnp.concatenate([params["user_emb"], params["item_emb"]], axis=0)
    n, d0 = ego0.shape

    # Real and lane-dense (128-padded) feature widths per layer.
    dims = [d0] + [w_gc.shape[1] for (w_gc, _, _, _) in params["layers"]]
    pdims = [_round_up(d, LANE) for d in dims]

    # MXU-matched tiles (256 on v6e/v7x; 128 on v5e), clamped to the toy N.
    tm = min(MXU_TILE, n)
    tk = min(MXU_TILE, n)
    assert n % tm == 0 and n % tk == 0

    # Cast the dominant operand to bf16 ONCE in the wrapper (half the DMA
    # bytes, no in-kernel O(N^2) cast).
    a_bf16 = a_hat.astype(jnp.bfloat16)

    ego_f32 = _pad2(ego0, n, pdims[0])           # zero-padded -> inert
    ego_bf16 = ego_f32.astype(jnp.bfloat16)

    all_embs = [ego0]
    for k, (w_gc, b_gc, w_bi, b_bi) in enumerate(params["layers"]):
        dp_in, dp_out = pdims[k], pdims[k + 1]
        # Hoist the weight/bias merge + bf16 cast out of the kernel (once).
        w_cat = jnp.concatenate(
            [_pad2(w_gc, dp_in, dp_out), _pad2(w_bi, dp_in, dp_out)],
            axis=0).astype(jnp.bfloat16)          # (2*dp_in, dp_out)
        b_cat = _pad2(b_gc + b_bi, 1, dp_out)     # (1, dp_out) fp32

        ego_f32, ego_bf16, norm = ngcf_layer(
            a_bf16, ego_bf16, ego_f32, w_cat, b_cat, tm=tm, tk=tk)
        all_embs.append(norm[:, :dims[k + 1]])    # drop inert pad columns

    all_embeddings = jnp.concatenate(all_embs, axis=1)
    u_g = all_embeddings[:n_user, :]
    i_g = all_embeddings[n_user:, :]
    return u_g[users, :], i_g[pos_items, :], i_g[neg_items, :]


# ----------------------------------------------------------------------------
# Pure-JAX fp32 reference (loose correctness check; kernel uses bf16 MXU)
# ----------------------------------------------------------------------------
def ngcf_reference(a_hat, params, users, pos_items, neg_items, n_user):
    ego = jnp.concatenate([params["user_emb"], params["item_emb"]], axis=0)
    all_e = [ego]
    for (w_gc, b_gc, w_bi, b_bi) in params["layers"]:
        side = a_hat @ ego
        s = (side + ego) @ w_gc + b_gc
        bi = (ego * side) @ w_bi + b_bi
        ego = jnp.where(s + bi >= 0, s + bi, 0.2 * (s + bi))
        nrm = jnp.sqrt(jnp.sum(ego * ego, axis=1, keepdims=True))
        all_e.append(ego / jnp.maximum(nrm, 1e-12))
    all_e = jnp.concatenate(all_e, axis=1)
    u_g, i_g = all_e[:n_user, :], all_e[n_user:, :]
    return u_g[users, :], i_g[pos_items, :], i_g[neg_items, :]


# ----------------------------------------------------------------------------
if __name__ == "__main__":
    n_user, n_item = 8, 8
    emb_size = 32
    layers = [32, 32]          # two NGCF layers
    batch = 4

    key = jax.random.PRNGKey(0)
    k_param, k_adj, k_u, k_p, k_n = jax.random.split(key, 5)

    params = init_params(k_param, n_user, n_item, emb_size, layers)
    a_hat = build_norm_adj(k_adj, n_user, n_item)

    users = jax.random.randint(k_u, (batch,), 0, n_user)
    pos_items = jax.random.randint(k_p, (batch,), 0, n_item)
    neg_items = jax.random.randint(k_n, (batch,), 0, n_item)

    u_emb, pos_emb, neg_emb = ngcf_forward(
        a_hat, params, users, pos_items, neg_items, n_user)
    jax.block_until_ready((u_emb, pos_emb, neg_emb))

    expected_dim = emb_size + sum(layers)
    assert u_emb.shape == (batch, expected_dim)
    assert pos_emb.shape == (batch, expected_dim)
    assert neg_emb.shape == (batch, expected_dim)

    # Loose tolerance: kernel uses bf16 MXU operands with fp32 accumulation.
    ru, rp, rn = ngcf_reference(a_hat, params, users, pos_items, neg_items, n_user)
    assert float(jnp.max(jnp.abs(u_emb - ru))) < 5e-2
    assert float(jnp.max(jnp.abs(pos_emb - rp))) < 5e-2
    assert float(jnp.max(jnp.abs(neg_emb - rn))) < 5e-2

    print("KERNEL_OK")
</pallas_src>

<mosaic_0001>
module attributes {stable_mosaic.version = 11 : i64} {
  func.func @ngcf_layer_kernel(%arg0: i32, %arg1: i32, %arg2: memref<16x16xbf16, #tpu.memory_space<vmem>>, %arg3: memref<16x128xbf16, #tpu.memory_space<vmem>>, %arg4: memref<16x128xf32, #tpu.memory_space<vmem>>, %arg5: memref<256x128xbf16, #tpu.memory_space<vmem>>, %arg6: memref<1x128xf32, #tpu.memory_space<vmem>>, %arg7: memref<16x128xf32, #tpu.memory_space<vmem>>, %arg8: memref<16x128xbf16, #tpu.memory_space<vmem>>, %arg9: memref<16x128xf32, #tpu.memory_space<vmem>>, %arg10: memref<16x128xf32, #tpu.memory_space<vmem>>) attributes {dimension_semantics = [#tpu.dimension_semantics<parallel>, #tpu.dimension_semantics<arbitrary>], iteration_bounds = array<i64: 1, 1>, scalar_prefetch = 0 : i64, scratch_operands = 1 : i64, tpu.core_type = #tpu.core_type<tc>, window_params = [{transform_indices = @transform_0, window_bounds = array<i64: 16, 16>}, {transform_indices = @transform_1, window_bounds = array<i64: 16, 128>}, {transform_indices = @transform_2, window_bounds = array<i64: 16, 128>}, {pipeline_mode = #tpu.pipeline_mode<synchronous>, transform_indices = @transform_3, window_bounds = array<i64: 256, 128>}, {pipeline_mode = #tpu.pipeline_mode<synchronous>, transform_indices = @transform_4, window_bounds = array<i64: 1, 128>}, {transform_indices = @transform_5, window_bounds = array<i64: 16, 128>}, {transform_indices = @transform_6, window_bounds = array<i64: 16, 128>}, {transform_indices = @transform_7, window_bounds = array<i64: 16, 128>}]} {
    %c0_i32 = arith.constant 0 : i32
    %0 = arith.cmpi eq, %arg1, %c0_i32 : i32
    %1 = arith.extui %0 : i1 to i32
    %c0_i32_0 = arith.constant 0 : i32
    %2 = arith.cmpi ne, %1, %c0_i32_0 : i32
    scf.if %2 {
      %cst_10 = arith.constant 0.000000e+00 : f32
      %12 = vector.broadcast %cst_10 : f32 to vector<16x128xf32>
      %c0_11 = arith.constant 0 : index
      %c0_12 = arith.constant 0 : index
      %13 = vector.load %arg10[%c0_11, %c0_12] : memref<16x128xf32, #tpu.memory_space<vmem>>, vector<16x128xf32>
      tpu.vector_store %arg10[%c0_11, %c0_12], %12 {strides = array<i32>} : memref<16x128xf32, #tpu.memory_space<vmem>>, vector<16x128xf32>,
    } else {
    }
    %c0 = arith.constant 0 : index
    %c0_1 = arith.constant 0 : index
    %3 = vector.load %arg10[%c0, %c0_1] : memref<16x128xf32, #tpu.memory_space<vmem>>, vector<16x128xf32>
    %c0_2 = arith.constant 0 : index
    %c0_3 = arith.constant 0 : index
    %4 = vector.load %arg2[%c0_2, %c0_3] : memref<16x16xbf16, #tpu.memory_space<vmem>>, vector<16x16xbf16>
    %c0_4 = arith.constant 0 : index
    %c0_5 = arith.constant 0 : index
    %5 = vector.load %arg3[%c0_4, %c0_5] : memref<16x128xbf16, #tpu.memory_space<vmem>>, vector<16x128xbf16>
    %cst = arith.constant dense<0.000000e+00> : vector<16x128xf32>
    %6 = tpu.matmul %4, %5, %cst {dimension_numbers = #tpu.dot_dimension_numbers<[1], [0], [0], [1], [0, 0, 1, 1], [], []>} : vector<16x16xbf16>, vector<16x128xbf16>, vector<16x128xf32> -> vector<16x128xf32>
    %7 = arith.addf %3, %6 : vector<16x128xf32>
    %c0_6 = arith.constant 0 : index
    %c0_7 = arith.constant 0 : index
    %8 = vector.load %arg10[%c0_6, %c0_7] : memref<16x128xf32, #tpu.memory_space<vmem>>, vector<16x128xf32>
    tpu.vector_store %arg10[%c0_6, %c0_7], %7 {strides = array<i32>} : memref<16x128xf32, #tpu.memory_space<vmem>>, vector<16x128xf32>,
    %c0_i32_8 = arith.constant 0 : i32
    %9 = arith.cmpi eq, %arg1, %c0_i32_8 : i32
    %10 = arith.extui %9 : i1 to i32
    %c0_i32_9 = arith.constant 0 : i32
    %11 = arith.cmpi ne, %10, %c0_i32_9 : i32
    scf.if %11 {
      %c0_10 = arith.constant 0 : index
      %c0_11 = arith.constant 0 : index
      %12 = vector.load %arg10[%c0_10, %c0_11] : memref<16x128xf32, #tpu.memory_space<vmem>>, vector<16x128xf32>
      %c0_12 = arith.constant 0 : index
      %c0_13 = arith.constant 0 : index
      %13 = vector.load %arg4[%c0_12, %c0_13] : memref<16x128xf32, #tpu.memory_space<vmem>>, vector<16x128xf32>
      %14 = arith.addf %12, %13 : vector<16x128xf32>
      %15 = arith.mulf %13, %12 : vector<16x128xf32>
      %16 = tpu.concatenate %14, %15 in 1 : vector<16x128xf32>, vector<16x128xf32> -> vector<16x256xf32>
      %17 = arith.truncf %16 : vector<16x256xf32> to vector<16x256xbf16>
      %c0_14 = arith.constant 0 : index
      %c0_15 = arith.constant 0 : index
      %18 = vector.load %arg5[%c0_14, %c0_15] : memref<256x128xbf16, #tpu.memory_space<vmem>>, vector<256x128xbf16>
      %cst_16 = arith.constant dense<0.000000e+00> : vector<16x128xf32>
      %19 = tpu.matmul %17, %18, %cst_16 {dimension_numbers = #tpu.dot_dimension_numbers<[1], [0], [0], [1], [0, 0, 1, 1], [], []>} : vector<16x256xbf16>, vector<256x128xbf16>, vector<16x128xf32> -> vector<16x128xf32>
      %c0_17 = arith.constant 0 : index
      %c0_18 = arith.constant 0 : index
      %20 = vector.load %arg6[%c0_17, %c0_18] : memref<1x128xf32, #tpu.memory_space<vmem>>, vector<1x128xf32>
      %21 = vector.broadcast %20 : vector<1x128xf32> to vector<16x128xf32>
      %22 = arith.addf %19, %21 : vector<16x128xf32>
      %cst_19 = arith.constant 2.000000e-01 : f32
      %23 = vector.broadcast %cst_19 : f32 to vector<16x128xf32>
      %24 = arith.mulf %23, %22 : vector<16x128xf32>
      %25 = arith.maximumf %22, %24 : vector<16x128xf32>
      %c0_20 = arith.constant 0 : index
      %c0_21 = arith.constant 0 : index
      %26 = vector.load %arg7[%c0_20, %c0_21] : memref<16x128xf32, #tpu.memory_space<vmem>>, vector<16x128xf32>
      tpu.vector_store %arg7[%c0_20, %c0_21], %25 {strides = array<i32>} : memref<16x128xf32, #tpu.memory_space<vmem>>, vector<16x128xf32>,
      %27 = arith.truncf %25 : vector<16x128xf32> to vector<16x128xbf16>
      %c0_22 = arith.constant 0 : index
      %c0_23 = arith.constant 0 : index
      %28 = vector.load %arg8[%c0_22, %c0_23] : memref<16x128xbf16, #tpu.memory_space<vmem>>, vector<16x128xbf16>
      tpu.vector_store %arg8[%c0_22, %c0_23], %27 {strides = array<i32>} : memref<16x128xbf16, #tpu.memory_space<vmem>>, vector<16x128xbf16>,
      %29 = arith.mulf %25, %25 : vector<16x128xf32>
      %cst_24 = arith.constant dense<0.000000e+00> : vector<16xf32>
      %30 = vector.multi_reduction <add>, %29, %cst_24 [1] : vector<16x128xf32> to vector<16xf32>
      %31 = vector.shape_cast %30 : vector<16xf32> to vector<16x1xf32>
      %cst_25 = arith.constant 1.000000e-24 : f32
      %32 = vector.broadcast %cst_25 : f32 to vector<16x1xf32>
      %33 = arith.maximumf %31, %32 : vector<16x1xf32>
      %34 = math.rsqrt %33 : vector<16x1xf32>
      %35 = vector.broadcast %34 : vector<16x1xf32> to vector<16x128xf32>
      %36 = arith.mulf %25, %35 : vector<16x128xf32>
      %c0_26 = arith.constant 0 : index
      %c0_27 = arith.constant 0 : index
      %37 = vector.load %arg9[%c0_26, %c0_27] : memref<16x128xf32, #tpu.memory_space<vmem>>, vector<16x128xf32>
      tpu.vector_store %arg9[%c0_26, %c0_27], %36 {strides = array<i32>} : memref<16x128xf32, #tpu.memory_space<vmem>>, vector<16x128xf32>,
    } else {
    }
    return
  }
  func.func @transform_0(%arg0: i32, %arg1: i32) -> (i32, i32) {
    %c0_i32 = arith.constant 0 : i32
    return %arg0, %arg1 : i32, i32
  }
  func.func @transform_1(%arg0: i32, %arg1: i32) -> (i32, i32) {
    %c0_i32 = arith.constant 0 : i32
    %c0_i32_0 = arith.constant 0 : i32
    return %arg1, %c0_i32 : i32, i32
  }
  func.func @transform_2(%arg0: i32, %arg1: i32) -> (i32, i32) {
    %c0_i32 = arith.constant 0 : i32
    %c0_i32_0 = arith.constant 0 : i32
    return %arg0, %c0_i32 : i32, i32
  }
  func.func @transform_3(%arg0: i32, %arg1: i32) -> (i32, i32) {
    %c0_i32 = arith.constant 0 : i32
    %c0_i32_0 = arith.constant 0 : i32
    %c0_i32_1 = arith.constant 0 : i32
    return %c0_i32, %c0_i32_0 : i32, i32
  }
  func.func @transform_4(%arg0: i32, %arg1: i32) -> (i32, i32) {
    %c0_i32 = arith.constant 0 : i32
    %c0_i32_0 = arith.constant 0 : i32
    %c0_i32_1 = arith.constant 0 : i32
    return %c0_i32, %c0_i32_0 : i32, i32
  }
  func.func @transform_5(%arg0: i32, %arg1: i32) -> (i32, i32) {
    %c0_i32 = arith.constant 0 : i32
    %c0_i32_0 = arith.constant 0 : i32
    return %arg0, %c0_i32 : i32, i32
  }
  func.func @transform_6(%arg0: i32, %arg1: i32) -> (i32, i32) {
    %c0_i32 = arith.constant 0 : i32
    %c0_i32_0 = arith.constant 0 : i32
    return %arg0, %c0_i32 : i32, i32
  }
  func.func @transform_7(%arg0: i32, %arg1: i32) -> (i32, i32) {
    %c0_i32 = arith.constant 0 : i32
    %c0_i32_0 = arith.constant 0 : i32
    return %arg0, %c0_i32 : i32, i32
  }
}

module attributes {stable_mosaic.version = 11 : i64} {
  func.func @ngcf_layer_kernel(%arg0: i32, %arg1: i32, %arg2: memref<16x16xbf16, #tpu.memory_space<vmem>>, %arg3: memref<16x128xbf16, #tpu.memory_space<vmem>>, %arg4: memref<16x128xf32, #tpu.memory_space<vmem>>, %arg5: memref<256x128xbf16, #tpu.memory_space<vmem>>, %arg6: memref<1x128xf32, #tpu.memory_space<vmem>>, %arg7: memref<16x128xf32, #tpu.memory_space<vmem>>, %arg8: memref<16x128xbf16, #tpu.memory_space<vmem>>, %arg9: memref<16x128xf32, #tpu.memory_space<vmem>>, %arg10: memref<16x128xf32, #tpu.memory_space<vmem>>) attributes {dimension_semantics = [#tpu.dimension_semantics<parallel>, #tpu.dimension_semantics<arbitrary>], iteration_bounds = array<i64: 1, 1>, scalar_prefetch = 0 : i64, scratch_operands = 1 : i64, tpu.core_type = #tpu.core_type<tc>, window_params = [{transform_indices = @transform_0, window_bounds = array<i64: 16, 16>}, {transform_indices = @transform_1, window_bounds = array<i64: 16, 128>}, {transform_indices = @transform_2, window_bounds = array<i64: 16, 128>}, {pipeline_mode = #tpu.pipeline_mode<synchronous>, transform_indices = @transform_3, window_bounds = array<i64: 256, 128>}, {pipeline_mode = #tpu.pipeline_mode<synchronous>, transform_indices = @transform_4, window_bounds = array<i64: 1, 128>}, {transform_indices = @transform_5, window_bounds = array<i64: 16, 128>}, {transform_indices = @transform_6, window_bounds = array<i64: 16, 128>}, {transform_indices = @transform_7, window_bounds = array<i64: 16, 128>}]} {
    %c0_i32 = arith.constant 0 : i32
    %0 = arith.cmpi eq, %arg1, %c0_i32 : i32
    %1 = arith.extui %0 : i1 to i32
    %c0_i32_0 = arith.constant 0 : i32
    %2 = arith.cmpi ne, %1, %c0_i32_0 : i32
    scf.if %2 {
      %cst_10 = arith.constant 0.000000e+00 : f32
      %12 = vector.broadcast %cst_10 : f32 to vector<16x128xf32>
      %c0_11 = arith.constant 0 : index
      %c0_12 = arith.constant 0 : index
      %13 = vector.load %arg10[%c0_11, %c0_12] : memref<16x128xf32, #tpu.memory_space<vmem>>, vector<16x128xf32>
      tpu.vector_store %arg10[%c0_11, %c0_12], %12 {strides = array<i32>} : memref<16x128xf32, #tpu.memory_space<vmem>>, vector<16x128xf32>,
    } else {
    }
    %c0 = arith.constant 0 : index
    %c0_1 = arith.constant 0 : index
    %3 = vector.load %arg10[%c0, %c0_1] : memref<16x128xf32, #tpu.memory_space<vmem>>, vector<16x128xf32>
    %c0_2 = arith.constant 0 : index
    %c0_3 = arith.constant 0 : index
    %4 = vector.load %arg2[%c0_2, %c0_3] : memref<16x16xbf16, #tpu.memory_space<vmem>>, vector<16x16xbf16>
    %c0_4 = arith.constant 0 : index
    %c0_5 = arith.constant 0 : index
    %5 = vector.load %arg3[%c0_4, %c0_5] : memref<16x128xbf16, #tpu.memory_space<vmem>>, vector<16x128xbf16>
    %cst = arith.constant dense<0.000000e+00> : vector<16x128xf32>
    %6 = tpu.matmul %4, %5, %cst {dimension_numbers = #tpu.dot_dimension_numbers<[1], [0], [0], [1], [0, 0, 1, 1], [], []>} : vector<16x16xbf16>, vector<16x128xbf16>, vector<16x128xf32> -> vector<16x128xf32>
    %7 = arith.addf %3, %6 : vector<16x128xf32>
    %c0_6 = arith.constant 0 : index
    %c0_7 = arith.constant 0 : index
    %8 = vector.load %arg10[%c0_6, %c0_7] : memref<16x128xf32, #tpu.memory_space<vmem>>, vector<16x128xf32>
    tpu.vector_store %arg10[%c0_6, %c0_7], %7 {strides = array<i32>} : memref<16x128xf32, #tpu.memory_space<vmem>>, vector<16x128xf32>,
    %c0_i32_8 = arith.constant 0 : i32
    %9 = arith.cmpi eq, %arg1, %c0_i32_8 : i32
    %10 = arith.extui %9 : i1 to i32
    %c0_i32_9 = arith.constant 0 : i32
    %11 = arith.cmpi ne, %10, %c0_i32_9 : i32
    scf.if %11 {
      %c0_10 = arith.constant 0 : index
      %c0_11 = arith.constant 0 : index
      %12 = vector.load %arg10[%c0_10, %c0_11] : memref<16x128xf32, #tpu.memory_space<vmem>>, vector<16x128xf32>
      %c0_12 = arith.constant 0 : index
      %c0_13 = arith.constant 0 : index
      %13 = vector.load %arg4[%c0_12, %c0_13] : memref<16x128xf32, #tpu.memory_space<vmem>>, vector<16x128xf32>
      %14 = arith.addf %12, %13 : vector<16x128xf32>
      %15 = arith.mulf %13, %12 : vector<16x128xf32>
      %16 = tpu.concatenate %14, %15 in 1 : vector<16x128xf32>, vector<16x128xf32> -> vector<16x256xf32>
      %17 = arith.truncf %16 : vector<16x256xf32> to vector<16x256xbf16>
      %c0_14 = arith.constant 0 : index
      %c0_15 = arith.constant 0 : index
      %18 = vector.load %arg5[%c0_14, %c0_15] : memref<256x128xbf16, #tpu.memory_space<vmem>>, vector<256x128xbf16>
      %cst_16 = arith.constant dense<0.000000e+00> : vector<16x128xf32>
      %19 = tpu.matmul %17, %18, %cst_16 {dimension_numbers = #tpu.dot_dimension_numbers<[1], [0], [0], [1], [0, 0, 1, 1], [], []>} : vector<16x256xbf16>, vector<256x128xbf16>, vector<16x128xf32> -> vector<16x128xf32>
      %c0_17 = arith.constant 0 : index
      %c0_18 = arith.constant 0 : index
      %20 = vector.load %arg6[%c0_17, %c0_18] : memref<1x128xf32, #tpu.memory_space<vmem>>, vector<1x128xf32>
      %21 = vector.broadcast %20 : vector<1x128xf32> to vector<16x128xf32>
      %22 = arith.addf %19, %21 : vector<16x128xf32>
      %cst_19 = arith.constant 2.000000e-01 : f32
      %23 = vector.broadcast %cst_19 : f32 to vector<16x128xf32>
      %24 = arith.mulf %23, %22 : vector<16x128xf32>
      %25 = arith.maximumf %22, %24 : vector<16x128xf32>
      %c0_20 = arith.constant 0 : index
      %c0_21 = arith.constant 0 : index
      %26 = vector.load %arg7[%c0_20, %c0_21] : memref<16x128xf32, #tpu.memory_space<vmem>>, vector<16x128xf32>
      tpu.vector_store %arg7[%c0_20, %c0_21], %25 {strides = array<i32>} : memref<16x128xf32, #tpu.memory_space<vmem>>, vector<16x128xf32>,
      %27 = arith.truncf %25 : vector<16x128xf32> to vector<16x128xbf16>
      %c0_22 = arith.constant 0 : index
      %c0_23 = arith.constant 0 : index
      %28 = vector.load %arg8[%c0_22, %c0_23] : memref<16x128xbf16, #tpu.memory_space<vmem>>, vector<16x128xbf16>
      tpu.vector_store %arg8[%c0_22, %c0_23], %27 {strides = array<i32>} : memref<16x128xbf16, #tpu.memory_space<vmem>>, vector<16x128xbf16>,
      %29 = arith.mulf %25, %25 : vector<16x128xf32>
      %cst_24 = arith.constant dense<0.000000e+00> : vector<16xf32>
      %30 = vector.multi_reduction <add>, %29, %cst_24 [1] : vector<16x128xf32> to vector<16xf32>
      %31 = vector.shape_cast %30 : vector<16xf32> to vector<16x1xf32>
      %cst_25 = arith.constant 1.000000e-24 : f32
      %32 = vector.broadcast %cst_25 : f32 to vector<16x1xf32>
      %33 = arith.maximumf %31, %32 : vector<16x1xf32>
      %34 = math.rsqrt %33 : vector<16x1xf32>
      %35 = vector.broadcast %34 : vector<16x1xf32> to vector<16x128xf32>
      %36 = arith.mulf %25, %35 : vector<16x128xf32>
      %c0_26 = arith.constant 0 : index
      %c0_27 = arith.constant 0 : index
      %37 = vector.load %arg9[%c0_26, %c0_27] : memref<16x128xf32, #tpu.memory_space<vmem>>, vector<16x128xf32>
      tpu.vector_store %arg9[%c0_26, %c0_27], %36 {strides = array<i32>} : memref<16x128xf32, #tpu.memory_space<vmem>>, vector<16x128xf32>,
    } else {
    }
    return
  }
  func.func @transform_0(%arg0: i32, %arg1: i32) -> (i32, i32) {
    %c0_i32 = arith.constant 0 : i32
    return %arg0, %arg1 : i32, i32
  }
  func.func @transform_1(%arg0: i32, %arg1: i32) -> (i32, i32) {
    %c0_i32 = arith.constant 0 : i32
    %c0_i32_0 = arith.constant 0 : i32
    return %arg1, %c0_i32 : i32, i32
  }
  func.func @transform_2(%arg0: i32, %arg1: i32) -> (i32, i32) {
    %c0_i32 = arith.constant 0 : i32
    %c0_i32_0 = arith.constant 0 : i32
    return %arg0, %c0_i32 : i32, i32
  }
  func.func @transform_3(%arg0: i32, %arg1: i32) -> (i32, i32) {
    %c0_i32 = arith.constant 0 : i32
    %c0_i32_0 = arith.constant 0 : i32
    %c0_i32_1 = arith.constant 0 : i32
    return %c0_i32, %c0_i32_0 : i32, i32
  }
  func.func @transform_4(%arg0: i32, %arg1: i32) -> (i32, i32) {
    %c0_i32 = arith.constant 0 : i32
    %c0_i32_0 = arith.constant 0 : i32
    %c0_i32_1 = arith.constant 0 : i32
    return %c0_i32, %c0_i32_0 : i32, i32
  }
  func.func @transform_5(%arg0: i32, %arg1: i32) -> (i32, i32) {
    %c0_i32 = arith.constant 0 : i32
    %c0_i32_0 = arith.constant 0 : i32
    return %arg0, %c0_i32 : i32, i32
  }
  func.func @transform_6(%arg0: i32, %arg1: i32) -> (i32, i32) {
    %c0_i32 = arith.constant 0 : i32
    %c0_i32_0 = arith.constant 0 : i32
    return %arg0, %c0_i32 : i32, i32
  }
  func.func @transform_7(%arg0: i32, %arg1: i32) -> (i32, i32) {
    %c0_i32 = arith.constant 0 : i32
    %c0_i32_0 = arith.constant 0 : i32
    return %arg0, %c0_i32 : i32, i32
  }
}

</mosaic_0001>

<bundles_post_ra>
// kernel: ngcf_forward.3
= control target key start
LH: loop header
LB: loop body
LE: loop exit
PB: predicated region body
PF: predicated region fallthrough
CT: control target
= control target key end

     0   :  { %13 = vsyncpa [#allocation4], 0  ;;  %v490_v1 = vmov 0.0   ;;  %vm491_vm0 = vmmov 0   ;;  %vm49_vm1 = vcmask 130048   ;;  %s638_s0 = inlined_call_operand.vmem [shape: bf16[16,16], index: 0, kind: input, shape index: {}]   ;;  %s639_s1 = inlined_call_operand.vmem [shape: bf16[16,128], index: 1, kind: input, shape index: {}]   ;;  %s640_s2 = inlined_call_operand.vmem [shape: f32[16,128], index: 2, kind: input, shape index: {}]   ;;  %s641_s3 = inlined_call_operand.vmem [shape: bf16[256,128], index: 3, kind: input, shape index: {}]   ;;  %s642_s4 = inlined_call_operand.vmem [shape: f32[1,128], index: 4, kind: input, shape index: {}]   ;;  %s643_s5 = inlined_call_operand.hbm [shape: f32[16,128], index: 5, kind: output, shape index: {0}]   ;;  %s644_s6 = inlined_call_operand.hbm [shape: bf16[16,128], index: 6, kind: output, shape index: {1}]   ;;  %s645_s7 = inlined_call_operand.vmem [shape: f32[16,128], index: 7, kind: output, shape index: {2}]  }
   0x1   :  { %v420_v0 = vld [vmem:[%s639_s1] sm:$0xff]   ;;  %406 = vmatprep.subr.bf16.mxu0 %v490_v1  ;;  %408 = vmatprep.mubr.msk.bf16.mxu0 %vm491_vm0, %v490_v1  ;;  %v424_v5 = vld [vmem:[%s641_s3 + $0x48] sm:$0xff]   ;;  %v426_v7 = vld [vmem:[%s641_s3 + $0x50] sm:$0xff]  }
   0x2   :  { %v421_v2 = vld [vmem:[%s638_s0] sm:$0xff]   ;;  %407 = vmatpush3.bf16.msra.mxu0 %v420_v0  ;;  %v425_v6 = vld [vmem:[%s641_s3 + $0x8] sm:$0xff]   ;;  %v427_v8 = vld [vmem:[%s641_s3 + $0x10] sm:$0xff]  }
   0x3   :  { %v422_v3 = vld [vmem:[%s641_s3 + $0x40] sm:$0xff]   ;;  %v428_v9 = vld [vmem:[%s641_s3 + $0x58] sm:$0xff]  }
   0x4   :  { %v423_v4 = vld [vmem:[%s641_s3] sm:$0xff]   ;;  %384 = vmatprep.subr.bf16.mxu1 %v422_v3  ;;  %v429_v10 = vld [vmem:[%s641_s3 + $0x18] sm:$0xff]  }
   0x5   :  { %409 = vmatmul.mubr.msk.bf16.vlgmr.msra.gmra.mrb[0].mxu0 %vm49_vm1, %v421_v2  ;;  %385 = vmatpush3.bf16.msra.mxu1 %v423_v4  ;;  %v430_v11 = vld [vmem:[%s641_s3 + $0x60] sm:$0xff]  }
   0x6   :  { %386 = vmatprep.subr.bf16.mxu1 %v424_v5 }
   0x9   :  { %387 = vmatpush3.bf16.msra.mxu1 %v425_v6 }
   0xa   :  { %388 = vmatprep.subr.bf16.mxu1 %v426_v7 }
   0xd   :  { %389 = vmatpush3.bf16.msra.mxu1 %v427_v8 }
   0xe   :  { %390 = vmatprep.subr.bf16.mxu1 %v428_v9 }
   0xf   :  { %14 = vsyncpa [#allocation6], 0  ;;  %v431_v12 = vld [vmem:[%s641_s3 + $0x20] sm:$0xff]   ;;  %v432_v13 = vld [vmem:[%s641_s3 + $0x68] sm:$0xff]   ;;  %s493_s15 = smov [#allocation5]  }
  0x10   :  { %v433_v14 = vld [vmem:[%s641_s3 + $0x28] sm:$0xff]   ;;  %v434_v15 = vld [vmem:[%s641_s3 + $0x70] sm:$0xff]   ;;  %v436_v17 = vld [vmem:[%s641_s3 + $0x78] sm:$0xff]   ;;  %s334_s16 = sshll.u32 %s493_s15, 4  ;;  %s601_s16 = int_to_ptr.vmem [resolvable:$true] %s334_s16 }
  0x11   :  { %391 = vmatpush3.bf16.msra.mxu1 %v429_v10  ;;  %v435_v16 = vld [vmem:[%s641_s3 + $0x30] sm:$0xff]   ;;  %v437_v18 = vld [vmem:[%s641_s3 + $0x38] sm:$0xff]   ;;  %v103_v20 = vld [vmem:[%s640_s2] sm:$0xff] }
  0x12   :  { %392 = vmatprep.subr.bf16.mxu1 %v430_v11  ;;  %v104_v21 = vld [vmem:[%s640_s2 + $0x8] sm:$0xff]  ;;  %v356_v32 = vld [vmem:[%s642_s4] ss:$0 sm:$0xff]  ;;  %s492_s2 = smov [#allocation3]  }
  0x13   :  { %s322_s4 = sshll.u32 %s492_s2, 4  ;;  %s323_s4 = int_to_ptr.vmem [resolvable:$true] %s322_s4 }
  0x14   :  { %s442_s17 = scalar_lea.vmem %s323_s4, 256  ;;  %p447_p1 = scmp.lt.s32.totalorder %s323_s4, %s323_s4 }
  0x15   :  { %393 = vmatpush3.bf16.msra.mxu1 %v431_v12  ;;  %p443_p0 = scmp.ne.s32.totalorder %s323_s4, %s442_s17  ;;  %p448_p2 = scmp.lt.s32.totalorder %s442_s17, %s442_s17 }
  0x16   :  { %394 = vmatprep.subr.bf16.mxu1 %v432_v13 }
  0x17   :  { %p449_p3 = por %p448_p2, %p447_p1 }
  0x19   :  { %395 = vmatpush3.bf16.msra.mxu1 %v433_v14  ;;  %p450_p4 = pnand %p449_p3, %p443_p0 }
  0x1a   :  { %396 = vmatprep.subr.bf16.mxu1 %v434_v15 }
  0x1d   :  { %397 = vmatpush3.bf16.msra.mxu1 %v435_v16 }
  0x1e   :  { %398 = vmatprep.subr.bf16.mxu1 %v436_v17 }
  0x21   :  { %399 = vmatpush3.bf16.msra.mxu1 %v437_v18 }
  0xd8   :  { %v87_v19 = vpop.f32.mrb[0].mxu0 }
  0xd9   :  { %v410_v22 = vpop.f32.mrb[1].mxu0  ;;  %v105_v24 = vadd.f32 %v103_v20, %v87_v19  ;;  %v107_v25 = vmul.f32 %v103_v20, %v87_v19 }
  0xda   :  { %v90_v23 = vpop.f32.mrb[2].mxu0 }
  0xdb   :  { %v106_v26 = vadd.f32 %v104_v21, %v90_v23  ;;  %v108_v27 = vmul.f32 %v104_v21, %v90_v23  ;;  %v411_v28 = vpop.f32.mrb[3].mxu0 }
  0xdd   :  { %v109_v29 = vpack.c.bf16 %v106_v26, %v105_v24  ;;  %v110_v30 = vpack.c.bf16 %v108_v27, %v107_v25 }
  0xdf   :  { %278 = vmatprep.mubr.bf16.mxu1 %v110_v30 }
  0xe0   :  { %279 = vmatmul.mubr.bf16.vlgmr.msra.gmra.mrb[0].mxu1 %v109_v29 }
 0x1b3   :  { %v400_v31 = vpop.f32.mrb[0].mxu1 }
 0x1b4   :  { %v401_v33 = vpop.f32.mrb[1].mxu1 }
 0x1b5   :  { %v402_v34 = vadd.f32 %v401_v33, %v400_v31  ;;  %v403_v35 = vpop.f32.mrb[2].mxu1 }
 0x1b6   :  { %v404_v36 = vpop.f32.mrb[3].mxu1 }
 0x1b7   :  { %v281_v37 = vadd.f32 %v402_v34, %v356_v32  ;;  %v405_v38 = vadd.f32 %v404_v36, %v403_v35 }
 0x1b9   :  { %v287_v39 = vmul.f32 0.2, %v281_v37  ;;  %v284_v40 = vadd.f32 %v405_v38, %v356_v32 }
 0x1bb   :  { %v289_v41 = vmax.f32 %v281_v37, %v287_v39  ;;  %v288_v42 = vmul.f32 0.2, %v284_v40 }
 0x1bd   :  { %291 = vst [vmem:[#allocation3] sm:$0xff] %v289_v41  ;;  %v290_v43 = vmax.f32 %v284_v40, %v288_v42  ;;  %v303_v44 = vmul.f32 %v289_v41, %v289_v41 }
 0x1bf   :  { %292 = vst [vmem:[#allocation3 + $0x8] sm:$0xff] %v290_v43  ;;  %305 = vadd.xlane.f32.xlu0 %v303_v44  ;;  %v380_v45 = vpack.c.bf16 %v290_v43, %v289_v41  ;;  %v304_v46 = vmul.f32 %v290_v43, %v290_v43 }
 0x1c1   :  { %381 = vst [vmem:[#allocation5] sm:$0xff] %v380_v45  }
 0x1c3   :  { %307 = vadd.xlane.f32.xlu0 %v304_v46 }
 0x1c4   :  { %453 = shalt.err (!%p450_p4)
}
 0x1c5   :  { %s454_s20 = scalar_lea.hbm %s643_s5, 256 }
 0x1c6   :  { %p455_p5 = scmp.ne.s32.totalorder %s643_s5, %s454_s20  ;;  %p458_p6 = scmp.lt.u32.totalorder %s454_s20, %s643_s5 }
 0x1c8   :  { %p460_p7 = pnand %p458_p6, %p455_p5 }
 0x1ca   :  { %463 = shalt.err (!%p460_p7)
}
 0x1cb   :  { %s494_s25 = smov 128   ;;  %s495_s26 = smov 8  }
 0x1cc   :  { %328 = dma.vmem_to_hbm [thread:$0]  %s323_s4, 256, %s643_s5, [#allocation4], %s494_s25, %s494_s25, %s495_s26  }
 0x1cd   :  { %s464_s29 = scalar_lea.vmem %s601_s16, 128  ;;  %p469_p9 = scmp.lt.s32.totalorder %s601_s16, %s601_s16 }
 0x1ce   :  { %p465_p8 = scmp.ne.s32.totalorder %s601_s16, %s464_s29  ;;  %p470_p10 = scmp.lt.s32.totalorder %s464_s29, %s464_s29 }
 0x1d0   :  { %p471_p11 = por %p470_p10, %p469_p9 }
 0x1d2   :  { %p472_p12 = pnand %p471_p11, %p465_p8 }
 0x1d4   :  { %475 = shalt.err (!%p472_p12)
}
 0x1d5   :  { %s476_s1 = scalar_lea.hbm %s644_s6, 128 }
 0x1d6   :  { %p477_p13 = scmp.ne.s32.totalorder %s644_s6, %s476_s1  ;;  %p480_p0 = scmp.lt.u32.totalorder %s476_s1, %s644_s6 }
 0x1d8   :  { %p482_p1 = pnand %p480_p0, %p477_p13 }
 0x1da   :  { %485 = shalt.err (!%p482_p1)
}
 0x1db   :  { %s496_s5 = smov 64   ;;  %s497_s12 = smov 4  }
 0x1dc   :  { %340 = dma.vmem_to_hbm [thread:$0]  %s601_s16, 128, %s644_s6, [#allocation6], %s496_s5, %s496_s5, %s497_s12  }
 0x24c   :  { %v306_v47 = vpop.xlane.xlu0 %305 }
 0x24d   :  { %v309_v48 = vmax.f32 %v306_v47, 1e-24 }
 0x24f   :  { %438 = vrsqrt.f32 %v309_v48 }
 0x250   :  { %v308_v49 = vpop.xlane.xlu0 %307 }
 0x251   :  { %v310_v50 = vmax.f32 %v308_v49, 1e-24 }
 0x253   :  { %440 = vrsqrt.f32 %v310_v50 }
 0x259   :  { %v439_v51 = vpop.eup %438 }
 0x25a   :  { %v313_v52 = vmul.f32 %v439_v51, %v289_v41 }
 0x25c   :  { %315 = vst [vmem:[%s645_s7] sm:$0xff] %v313_v52 }
 0x25d   :  { %v441_v53 = vpop.eup %440 }
 0x25e   :  { %v314_v54 = vmul.f32 %v441_v53, %v290_v43 }
 0x260   :  { %316 = vst [vmem:[%s645_s7 + $0x8] sm:$0xff] %v314_v54 }
 0x261   :  { %486 = dma.done.wait [#allocation4], 256  }
 0x262   :  { %487 = vsyncadd [#allocation4], 4294967040 }
 0x263   :  { %488 = dma.done.wait [#allocation6], 128  }
 0x264   :  { %489 = vsyncadd [#allocation6], 4294967168 }
 0x265   :  { %351 = vsyncpa [#allocation4], 1 }
 0x266   :  { %352 = vsyncpa [#allocation6], 1 }

// kernel: ngcf_forward.2
= control target key start
LH: loop header
LB: loop body
LE: loop exit
PB: predicated region body
PF: predicated region fallthrough
CT: control target
= control target key end

     0   :  { %v410_v0 = vmov 0.0   ;;  %vm411_vm0 = vmmov 0   ;;  %vm47_vm1 = vcmask 130048   ;;  %s530_s1 = inlined_call_operand.vmem [shape: bf16[16,128], index: 1, kind: input, shape index: {}]   ;;  %s531_s0 = inlined_call_operand.vmem [shape: bf16[16,16], index: 0, kind: input, shape index: {}]   ;;  %s532_s3 = inlined_call_operand.vmem [shape: bf16[256,128], index: 3, kind: input, shape index: {}]   ;;  %s533_s2 = inlined_call_operand.vmem [shape: f32[16,128], index: 2, kind: input, shape index: {}]   ;;  %s534_s4 = inlined_call_operand.vmem [shape: f32[1,128], index: 4, kind: input, shape index: {}]   ;;  %s535_s5 = inlined_call_operand.vmem [shape: f32[16,128], index: 5, kind: output, shape index: {0}]   ;;  %s536_s6 = inlined_call_operand.vmem [shape: bf16[16,128], index: 6, kind: output, shape index: {1}]   ;;  %s537_s7 = inlined_call_operand.vmem [shape: f32[16,128], index: 7, kind: output, shape index: {2}]  }
   0x1   :  { %380 = vmatprep.subr.bf16.mxu0 %v410_v0  ;;  %v388_v1 = vld [vmem:[%s530_s1] sm:$0xff]   ;;  %382 = vmatprep.mubr.msk.bf16.mxu0 %vm411_vm0, %v410_v0  ;;  %v392_v5 = vld [vmem:[%s532_s3 + $0x48] sm:$0xff]   ;;  %v394_v7 = vld [vmem:[%s532_s3 + $0x50] sm:$0xff]  }
   0x2   :  { %v389_v2 = vld [vmem:[%s531_s0] sm:$0xff]   ;;  %381 = vmatpush3.bf16.msra.mxu0 %v388_v1  ;;  %v393_v6 = vld [vmem:[%s532_s3 + $0x8] sm:$0xff]   ;;  %v395_v8 = vld [vmem:[%s532_s3 + $0x10] sm:$0xff]  }
   0x3   :  { %v390_v3 = vld [vmem:[%s532_s3 + $0x40] sm:$0xff]   ;;  %v396_v9 = vld [vmem:[%s532_s3 + $0x58] sm:$0xff]   ;;  %v400_v13 = vld [vmem:[%s532_s3 + $0x68] sm:$0xff]  }
   0x4   :  { %v391_v4 = vld [vmem:[%s532_s3] sm:$0xff]   ;;  %358 = vmatprep.subr.bf16.mxu1 %v390_v3  ;;  %v397_v10 = vld [vmem:[%s532_s3 + $0x18] sm:$0xff]   ;;  %v401_v14 = vld [vmem:[%s532_s3 + $0x28] sm:$0xff]  }
   0x5   :  { %383 = vmatmul.mubr.msk.bf16.vlgmr.msra.gmra.mrb[0].mxu0 %vm47_vm1, %v389_v2  ;;  %359 = vmatpush3.bf16.msra.mxu1 %v391_v4  ;;  %v398_v11 = vld [vmem:[%s532_s3 + $0x60] sm:$0xff]   ;;  %v402_v15 = vld [vmem:[%s532_s3 + $0x70] sm:$0xff]   ;;  %v404_v17 = vld [vmem:[%s532_s3 + $0x78] sm:$0xff]  }
   0x6   :  { %360 = vmatprep.subr.bf16.mxu1 %v392_v5  ;;  %v399_v12 = vld [vmem:[%s532_s3 + $0x20] sm:$0xff]   ;;  %v403_v16 = vld [vmem:[%s532_s3 + $0x30] sm:$0xff]   ;;  %v405_v18 = vld [vmem:[%s532_s3 + $0x38] sm:$0xff]  }
   0x7   :  { %v101_v20 = vld [vmem:[%s533_s2] sm:$0xff]  ;;  %v102_v21 = vld [vmem:[%s533_s2 + $0x8] sm:$0xff] }
   0x8   :  { %v330_v32 = vld [vmem:[%s534_s4] ss:$0 sm:$0xff] }
   0x9   :  { %361 = vmatpush3.bf16.msra.mxu1 %v393_v6 }
   0xa   :  { %362 = vmatprep.subr.bf16.mxu1 %v394_v7 }
   0xd   :  { %363 = vmatpush3.bf16.msra.mxu1 %v395_v8 }
   0xe   :  { %364 = vmatprep.subr.bf16.mxu1 %v396_v9 }
  0x11   :  { %365 = vmatpush3.bf16.msra.mxu1 %v397_v10 }
  0x12   :  { %366 = vmatprep.subr.bf16.mxu1 %v398_v11 }
  0x15   :  { %367 = vmatpush3.bf16.msra.mxu1 %v399_v12 }
  0x16   :  { %368 = vmatprep.subr.bf16.mxu1 %v400_v13 }
  0x19   :  { %369 = vmatpush3.bf16.msra.mxu1 %v401_v14 }
  0x1a   :  { %370 = vmatprep.subr.bf16.mxu1 %v402_v15 }
  0x1d   :  { %371 = vmatpush3.bf16.msra.mxu1 %v403_v16 }
  0x1e   :  { %372 = vmatprep.subr.bf16.mxu1 %v404_v17 }
  0x21   :  { %373 = vmatpush3.bf16.msra.mxu1 %v405_v18 }
  0xd8   :  { %v85_v19 = vpop.f32.mrb[0].mxu0 }
  0xd9   :  { %v384_v22 = vpop.f32.mrb[1].mxu0  ;;  %v103_v24 = vadd.f32 %v101_v20, %v85_v19  ;;  %v105_v25 = vmul.f32 %v101_v20, %v85_v19 }
  0xda   :  { %v88_v23 = vpop.f32.mrb[2].mxu0 }
  0xdb   :  { %v104_v26 = vadd.f32 %v102_v21, %v88_v23  ;;  %v106_v27 = vmul.f32 %v102_v21, %v88_v23  ;;  %v385_v28 = vpop.f32.mrb[3].mxu0 }
  0xdd   :  { %v107_v29 = vpack.c.bf16 %v104_v26, %v103_v24  ;;  %v108_v30 = vpack.c.bf16 %v106_v27, %v105_v25 }
  0xdf   :  { %276 = vmatprep.mubr.bf16.mxu1 %v108_v30 }
  0xe0   :  { %277 = vmatmul.mubr.bf16.vlgmr.msra.gmra.mrb[0].mxu1 %v107_v29 }
 0x1b3   :  { %v374_v31 = vpop.f32.mrb[0].mxu1 }
 0x1b4   :  { %v375_v33 = vpop.f32.mrb[1].mxu1 }
 0x1b5   :  { %v376_v34 = vadd.f32 %v375_v33, %v374_v31  ;;  %v377_v35 = vpop.f32.mrb[2].mxu1 }
 0x1b6   :  { %v378_v36 = vpop.f32.mrb[3].mxu1 }
 0x1b7   :  { %v279_v37 = vadd.f32 %v376_v34, %v330_v32  ;;  %v379_v38 = vadd.f32 %v378_v36, %v377_v35 }
 0x1b9   :  { %v285_v39 = vmul.f32 0.2, %v279_v37  ;;  %v282_v40 = vadd.f32 %v379_v38, %v330_v32 }
 0x1bb   :  { %v287_v41 = vmax.f32 %v279_v37, %v285_v39  ;;  %v286_v42 = vmul.f32 0.2, %v282_v40 }
 0x1bd   :  { %289 = vst [vmem:[%s535_s5] sm:$0xff] %v287_v41  ;;  %v288_v43 = vmax.f32 %v282_v40, %v286_v42  ;;  %v301_v44 = vmul.f32 %v287_v41, %v287_v41 }
 0x1bf   :  { %290 = vst [vmem:[%s535_s5 + $0x8] sm:$0xff] %v288_v43  ;;  %v354_v45 = vpack.c.bf16 %v288_v43, %v287_v41  ;;  %303 = vadd.xlane.f32.xlu0 %v301_v44  ;;  %v302_v46 = vmul.f32 %v288_v43, %v288_v43 }
 0x1c1   :  { %355 = vst [vmem:[%s536_s6] sm:$0xff] %v354_v45  }
 0x1c3   :  { %305 = vadd.xlane.f32.xlu0 %v302_v46 }
 0x24c   :  { %v304_v47 = vpop.xlane.xlu0 %303 }
 0x24d   :  { %v307_v48 = vmax.f32 %v304_v47, 1e-24 }
 0x24f   :  { %406 = vrsqrt.f32 %v307_v48 }
 0x250   :  { %v306_v49 = vpop.xlane.xlu0 %305 }
 0x251   :  { %v308_v50 = vmax.f32 %v306_v49, 1e-24 }
 0x253   :  { %408 = vrsqrt.f32 %v308_v50 }
 0x259   :  { %v407_v51 = vpop.eup %406 }
 0x25a   :  { %v311_v52 = vmul.f32 %v407_v51, %v287_v41 }
 0x25c   :  { %313 = vst [vmem:[%s537_s7] sm:$0xff] %v311_v52 }
 0x25d   :  { %v409_v53 = vpop.eup %408 }
 0x25e   :  { %v312_v54 = vmul.f32 %v409_v53, %v288_v43 }
 0x260   :  { %314 = vst [vmem:[%s537_s7 + $0x8] sm:$0xff] %v312_v54 }

</bundles_post_ra>
